<compile_context>
chip_gen: v7x
topology: tpu7x:2x2x1
jax: 0.10.0
libtpu: 0.0.40
codegen_flags: <defaults>
</compile_context>

<pallas_src>
import functools

import jax
import jax.numpy as jnp
from jax.experimental import pallas as pl
from jax.experimental.pallas import tpu as pltpu


def _layernorm_kernel(x_ref, scale_ref, shift_ref, o_ref, *, eps):
    # Single pass over the tile: one read of x feeds both moments (f32 accum).
    x = x_ref[...].astype(jnp.float32)                       # [tr, D]
    d = x.shape[-1]
    s1 = jnp.sum(x, axis=-1, keepdims=True)                  # [tr, 1]
    s2 = jnp.sum(x * x, axis=-1, keepdims=True)              # [tr, 1]
    mean = s1 * jnp.float32(1.0 / d)
    # torch.Tensor.var default: unbiased (correction=1) -> divide by (D - 1).
    var = (s2 - mean * s1) * jnp.float32(1.0 / (d - 1))
    var = jnp.maximum(var, 0.0)                              # guard fp rounding
    inv_std = jax.lax.rsqrt(var + jnp.float32(eps))
    scale = scale_ref[...].astype(jnp.float32)               # [1, D]
    shift = shift_ref[...].astype(jnp.float32)               # [1, D]
    o_ref[...] = ((x - mean) * inv_std * scale + shift).astype(o_ref.dtype)


def _pick_row_tile(rows, d, in_bytes, *, max_tile=1024,
                   vmem_budget_bytes=40 * 1024 * 1024):
    """Largest row tile (multiple of 8, <= max_tile) that fits the VMEM budget.

    Budget model per row of tile: double-buffered input + double-buffered
    output (in the input dtype) plus ~3 tile-sized f32 temporaries inside the
    kernel body.
    """
    bytes_per_row = d * (2 * in_bytes + 2 * in_bytes + 3 * 4)
    tr = vmem_budget_bytes // max(bytes_per_row, 1)
    tr = int(min(tr, max_tile))
    tr = max(8, (tr // 8) * 8)                  # multiple of 8, at least 8
    # Do not exceed the (8-padded) number of rows.
    rows_padded8 = ((rows + 7) // 8) * 8
    return min(tr, rows_padded8)


def layer_norm(x, scale, shift, *, eps=1e-5):
    """LayerNorm over the last axis of x (any leading dims)."""
    orig_shape = x.shape
    d = orig_shape[-1]
    rows = 1
    for s in orig_shape[:-1]:
        rows *= s

    x2 = x.reshape(rows, d)
    scale2 = scale.reshape(1, d)
    shift2 = shift.reshape(1, d)

    in_bytes = jnp.dtype(x.dtype).itemsize
    tr = _pick_row_tile(rows, d, in_bytes)

    # Pad rows up to a multiple of the tile so every block is full-extent and
    # 8-aligned on the sublane axis.  Padded (zero) rows are computed and then
    # discarded; they produce finite values (var=0, rsqrt(eps)).
    padded_rows = ((rows + tr - 1) // tr) * tr
    if padded_rows != rows:
        x2 = jnp.pad(x2, ((0, padded_rows - rows), (0, 0)))
    grid = (padded_rows // tr,)

    # NOTE: d=768 is a multiple of 128, so the full-extent feature block stores
    # are unmasked lane-dense vst's.  For odd feature sizes, pad d to 128 here.

    cost = pl.CostEstimate(
        flops=8 * padded_rows * d,
        transcendentals=padded_rows,
        bytes_accessed=2 * padded_rows * d * in_bytes + 2 * d * 4,
    )

    out = pl.pallas_call(
        functools.partial(_layernorm_kernel, eps=eps),
        out_shape=jax.ShapeDtypeStruct((padded_rows, d), x.dtype),
        grid_spec=pltpu.PrefetchScalarGridSpec(
            num_scalar_prefetch=0,
            grid=grid,
            in_specs=[
                pl.BlockSpec((tr, d), lambda i: (i, 0)),   # x rows tile
                pl.BlockSpec((1, d), lambda i: (0, 0)),    # scale (broadcast)
                pl.BlockSpec((1, d), lambda i: (0, 0)),    # shift (broadcast)
            ],
            out_specs=pl.BlockSpec((tr, d), lambda i: (i, 0)),
        ),
        compiler_params=pltpu.CompilerParams(
            dimension_semantics=("parallel",),
            vmem_limit_bytes=48 * 1024 * 1024,
        ),
        cost_estimate=cost,
    )(x2, scale2, shift2)

    if padded_rows != rows:
        out = out[:rows]
    return out.reshape(orig_shape)


if __name__ == "__main__":
    key = jax.random.PRNGKey(0)
    emb_dim = 768
    # Shape implied by the module's usage: x = torch.randn(2, 4, 768)
    x = jax.random.normal(key, (2, 4, emb_dim), dtype=jnp.float32)

    # Deterministic parameter init, same as nn.Parameter(ones/zeros).
    scale = jnp.ones((emb_dim,), dtype=jnp.float32)
    shift = jnp.zeros((emb_dim,), dtype=jnp.float32)

    out = layer_norm(x, scale, shift, eps=1e-5)
    out = jax.block_until_ready(out)

    # Reference check in plain JAX (torch-default unbiased variance, D-1).
    mean = jnp.mean(x, axis=-1, keepdims=True)
    var = jnp.sum((x - mean) ** 2, axis=-1, keepdims=True) / (emb_dim - 1)
    ref = scale * (x - mean) / jnp.sqrt(var + 1e-5) + shift
    assert out.shape == x.shape and out.dtype == x.dtype
    assert jnp.max(jnp.abs(out - ref)) < 1e-3

    print("KERNEL_OK")
</pallas_src>

<mosaic_0001>
module attributes {stable_mosaic.version = 11 : i64} {
  func.func @_layernorm_kernel(%arg0: i32, %arg1: memref<8x768xf32, #tpu.memory_space<vmem>>, %arg2: memref<1x768xf32, #tpu.memory_space<vmem>>, %arg3: memref<1x768xf32, #tpu.memory_space<vmem>>, %arg4: memref<8x768xf32, #tpu.memory_space<vmem>>) attributes {dimension_semantics = [#tpu.dimension_semantics<parallel>], iteration_bounds = array<i64: 1>, scalar_prefetch = 0 : i64, scratch_operands = 0 : i64, tpu.core_type = #tpu.core_type<tc>, window_params = [{transform_indices = @transform_0, window_bounds = array<i64: 8, 768>}, {pipeline_mode = #tpu.pipeline_mode<synchronous>, transform_indices = @transform_1, window_bounds = array<i64: 1, 768>}, {pipeline_mode = #tpu.pipeline_mode<synchronous>, transform_indices = @transform_2, window_bounds = array<i64: 1, 768>}, {transform_indices = @transform_3, window_bounds = array<i64: 8, 768>}]} {
    %c0 = arith.constant 0 : index
    %c0_0 = arith.constant 0 : index
    %0 = vector.load %arg1[%c0, %c0_0] : memref<8x768xf32, #tpu.memory_space<vmem>>, vector<8x768xf32>
    %cst = arith.constant dense<0.000000e+00> : vector<8xf32>
    %1 = vector.multi_reduction <add>, %0, %cst [1] : vector<8x768xf32> to vector<8xf32>
    %2 = vector.shape_cast %1 : vector<8xf32> to vector<8x1xf32>
    %3 = arith.mulf %0, %0 : vector<8x768xf32>
    %cst_1 = arith.constant dense<0.000000e+00> : vector<8xf32>
    %4 = vector.multi_reduction <add>, %3, %cst_1 [1] : vector<8x768xf32> to vector<8xf32>
    %5 = vector.shape_cast %4 : vector<8xf32> to vector<8x1xf32>
    %cst_2 = arith.constant 0.00130208337 : f32
    %6 = vector.broadcast %cst_2 : f32 to vector<8x1xf32>
    %7 = arith.mulf %2, %6 : vector<8x1xf32>
    %8 = arith.mulf %7, %2 : vector<8x1xf32>
    %9 = arith.subf %5, %8 : vector<8x1xf32>
    %cst_3 = arith.constant 0.00130378094 : f32
    %10 = vector.broadcast %cst_3 : f32 to vector<8x1xf32>
    %11 = arith.mulf %9, %10 : vector<8x1xf32>
    %cst_4 = arith.constant 0.000000e+00 : f32
    %12 = vector.broadcast %cst_4 : f32 to vector<8x1xf32>
    %13 = arith.maximumf %11, %12 : vector<8x1xf32>
    %cst_5 = arith.constant 9.99999974E-6 : f32
    %14 = vector.broadcast %cst_5 : f32 to vector<8x1xf32>
    %15 = arith.addf %13, %14 : vector<8x1xf32>
    %16 = math.rsqrt %15 : vector<8x1xf32>
    %c0_6 = arith.constant 0 : index
    %c0_7 = arith.constant 0 : index
    %17 = vector.load %arg2[%c0_6, %c0_7] : memref<1x768xf32, #tpu.memory_space<vmem>>, vector<1x768xf32>
    %c0_8 = arith.constant 0 : index
    %c0_9 = arith.constant 0 : index
    %18 = vector.load %arg3[%c0_8, %c0_9] : memref<1x768xf32, #tpu.memory_space<vmem>>, vector<1x768xf32>
    %19 = vector.broadcast %7 : vector<8x1xf32> to vector<8x768xf32>
    %20 = arith.subf %0, %19 : vector<8x768xf32>
    %21 = vector.broadcast %16 : vector<8x1xf32> to vector<8x768xf32>
    %22 = arith.mulf %20, %21 : vector<8x768xf32>
    %23 = vector.broadcast %17 : vector<1x768xf32> to vector<8x768xf32>
    %24 = arith.mulf %22, %23 : vector<8x768xf32>
    %25 = vector.broadcast %18 : vector<1x768xf32> to vector<8x768xf32>
    %26 = arith.addf %24, %25 : vector<8x768xf32>
    %c0_10 = arith.constant 0 : index
    %c0_11 = arith.constant 0 : index
    %27 = vector.load %arg4[%c0_10, %c0_11] : memref<8x768xf32, #tpu.memory_space<vmem>>, vector<8x768xf32>
    tpu.vector_store %arg4[%c0_10, %c0_11], %26 {strides = array<i32>} : memref<8x768xf32, #tpu.memory_space<vmem>>, vector<8x768xf32>,
    return
  }
  func.func @transform_0(%arg0: i32) -> (i32, i32) {
    %c0_i32 = arith.constant 0 : i32
    %c0_i32_0 = arith.constant 0 : i32
    return %arg0, %c0_i32 : i32, i32
  }
  func.func @transform_1(%arg0: i32) -> (i32, i32) {
    %c0_i32 = arith.constant 0 : i32
    %c0_i32_0 = arith.constant 0 : i32
    %c0_i32_1 = arith.constant 0 : i32
    return %c0_i32, %c0_i32_0 : i32, i32
  }
  func.func @transform_2(%arg0: i32) -> (i32, i32) {
    %c0_i32 = arith.constant 0 : i32
    %c0_i32_0 = arith.constant 0 : i32
    %c0_i32_1 = arith.constant 0 : i32
    return %c0_i32, %c0_i32_0 : i32, i32
  }
  func.func @transform_3(%arg0: i32) -> (i32, i32) {
    %c0_i32 = arith.constant 0 : i32
    %c0_i32_0 = arith.constant 0 : i32
    return %arg0, %c0_i32 : i32, i32
  }
}

</mosaic_0001>

<bundles_post_ra>
// kernel: tpu_custom_call.1
= control target key start
LH: loop header
LB: loop body
LE: loop exit
PB: predicated region body
PF: predicated region fallthrough
CT: control target
= control target key end

     0   :  { %8 = vsyncpa [#allocation3], 0  ;;  %s321_s0 = inlined_call_operand.hbm [shape: f32[8,768], index: 0, kind: input, shape index: {}]   ;;  %s322_s1 = inlined_call_operand.hbm [shape: f32[1,768], index: 1, kind: input, shape index: {}]   ;;  %s323_s2 = inlined_call_operand.vmem [shape: f32[1,768], index: 2, kind: input, shape index: {}]   ;;  %s324_s3 = inlined_call_operand.hbm [shape: f32[8,768], index: 3, kind: output, shape index: {}]  }
   0x1   :  { %9 = vsyncpa [#allocation6], 0 }
   0x2   :  { %10 = vsyncpa [#allocation4], 0  ;;  %s259_s12 = smov [#allocation2]   ;;  %s260_s14 = smov [#allocation5]  }
   0x3   :  { %s17_s13 = sshll.u32 %s259_s12, 4  ;;  %s27_s15 = sshll.u32 %s260_s14, 4  ;;  %s18_s13 = int_to_ptr.vmem [resolvable:$true] %s17_s13  ;;  %s28_s15 = int_to_ptr.vmem [resolvable:$true] %s27_s15 }
   0x4   :  { %s187_s18 = scalar_lea.hbm %s321_s0, 768 }
   0x5   :  { %p188_p0 = scmp.ne.s32.totalorder %s321_s0, %s187_s18  ;;  %p191_p1 = scmp.lt.u32.totalorder %s187_s18, %s321_s0 }
   0x7   :  { %p193_p2 = pnand %p191_p1, %p188_p0 }
   0x9   :  { %196 = shalt.err (!%p193_p2)
}
   0xa   :  { %s197_s23 = scalar_lea.vmem %s18_s13, 768  ;;  %p202_p4 = scmp.lt.s32.totalorder %s18_s13, %s18_s13 }
   0xb   :  { %p198_p3 = scmp.ne.s32.totalorder %s18_s13, %s197_s23  ;;  %p203_p5 = scmp.lt.s32.totalorder %s197_s23, %s197_s23 }
   0xd   :  { %p204_p6 = por %p203_p5, %p202_p4 }
   0xf   :  { %p205_p7 = pnand %p204_p6, %p198_p3 }
  0x11   :  { %208 = shalt.err (!%p205_p7)
}
  0x12   :  { %20 = dma.hbm_to_vmem [thread:$0]  %s321_s0, 768, %s18_s13, [#allocation3]  }
  0x13   :  { %s209_s28 = scalar_lea.hbm %s322_s1, 96 }
  0x14   :  { %p210_p8 = scmp.ne.s32.totalorder %s322_s1, %s209_s28  ;;  %p213_p9 = scmp.lt.u32.totalorder %s209_s28, %s322_s1 }
  0x16   :  { %p215_p10 = pnand %p213_p9, %p210_p8 }
  0x18   :  { %218 = shalt.err (!%p215_p10)
}
  0x19   :  { %s219_s6 = scalar_lea.vmem %s28_s15, 96  ;;  %p224_p12 = scmp.lt.s32.totalorder %s28_s15, %s28_s15 }
  0x1a   :  { %p220_p11 = scmp.ne.s32.totalorder %s28_s15, %s219_s6  ;;  %p225_p13 = scmp.lt.s32.totalorder %s219_s6, %s219_s6 }
  0x1c   :  { %p226_p0 = por %p225_p13, %p224_p12 }
  0x1e   :  { %p227_p1 = pnand %p226_p0, %p220_p11 }
  0x20   :  { %230 = shalt.err (!%p227_p1)
}
  0x21   :  { %30 = dma.hbm_to_vmem [thread:$0]  %s322_s1, 96, %s28_s15, [#allocation6]  }
  0x22   :  { %253 = dma.done.wait [#allocation3], 768  }
  0x23   :  { %254 = vsyncadd [#allocation3], 4294966528 }
  0x24   :  { %255 = dma.done.wait [#allocation6], 96  }
  0x25   :  { %256 = vsyncadd [#allocation6], 4294967200  ;;  %v39_v0 = vld [vmem:[#allocation2] sm:$0xff]  ;;  %v40_v1 = vld [vmem:[#allocation2 + $0x8] sm:$0xff]  ;;  %v87_v28 = vlaneseq }
  0x26   :  { %v41_v2 = vld [vmem:[#allocation2 + $0x10] sm:$0xff]  ;;  %v45_v3 = vadd.f32 %v40_v1, %v39_v0  ;;  %v52_v4 = vmul.f32 %v39_v0, %v39_v0  ;;  %v53_v5 = vmul.f32 %v40_v1, %v40_v1  ;;  %v42_v7 = vld [vmem:[#allocation2 + $0x18] sm:$0xff]  ;;  %v43_v11 = vld [vmem:[#allocation2 + $0x20] sm:$0xff] }
  0x27   :  { %v54_v6 = vmul.f32 %v41_v2, %v41_v2  ;;  %v55_v9 = vmul.f32 %v42_v7, %v42_v7  ;;  %v56_v13 = vmul.f32 %v43_v11, %v43_v11  ;;  %v44_v15 = vld [vmem:[#allocation2 + $0x28] sm:$0xff]  ;;  %v88_v31 = vshrl.u32 %v87_v28, 7  ;;  %v72_v36 = vld [vmem:[#allocation5] sm:$0x3f]  ;;  %v73_v39 = vld [vmem:[%s323_s2] sm:$0x3f] }
  0x28   :  { %v46_v8 = vadd.f32 %v45_v3, %v41_v2  ;;  %v58_v10 = vadd.f32 %v53_v5, %v52_v4  ;;  %v57_v17 = vmul.f32 %v44_v15, %v44_v15  ;;  %s261_s2 = smov [#allocation7]  }
  0x29   :  { %v89_v32 = vsub.s32 0, %v88_v31  ;;  %v93_v33 = vsub.s32 1, %v88_v31  ;;  %v97_v34 = vsub.s32 2, %v88_v31  ;;  %v101_v35 = vsub.s32 3, %v88_v31  ;;  %s172_s9 = sshll.u32 %s261_s2, 4  ;;  %s173_s9 = int_to_ptr.vmem [resolvable:$true] %s172_s9 }
  0x2a   :  { %v47_v12 = vadd.f32 %v46_v8, %v42_v7  ;;  %v59_v14 = vadd.f32 %v58_v10, %v54_v6  ;;  %v105_v37 = vsub.s32 4, %v88_v31  ;;  %v109_v38 = vsub.s32 5, %v88_v31  ;;  %s231_s10 = scalar_lea.vmem %s173_s9, 768  ;;  %p236_p3 = scmp.lt.s32.totalorder %s173_s9, %s173_s9 }
  0x2b   :  { %v90_v40 = vrot.slane %v72_v36, %v89_v32  ;;  %v94_v41 = vrot.slane %v72_v36, %v93_v33  ;;  %v98_v42 = vrot.slane %v72_v36, %v97_v34  ;;  %v102_v43 = vrot.slane %v72_v36, %v101_v35  ;;  %p232_p2 = scmp.ne.s32.totalorder %s173_s9, %s231_s10  ;;  %p237_p4 = scmp.lt.s32.totalorder %s231_s10, %s231_s10 }
  0x2c   :  { %v48_v16 = vadd.f32 %v47_v12, %v43_v11  ;;  %v60_v18 = vadd.f32 %v59_v14, %v55_v9  ;;  %v106_v44 = vrot.slane %v72_v36, %v105_v37  ;;  %v110_v45 = vrot.slane %v72_v36, %v109_v38 }
  0x2d   :  { %v127_v46 = vrot.slane %v73_v39, %v89_v32  ;;  %v131_v47 = vrot.slane %v73_v39, %v93_v33  ;;  %v135_v55 = vrot.slane %v73_v39, %v97_v34  ;;  %v139_v56 = vrot.slane %v73_v39, %v101_v35  ;;  %p238_p5 = por %p237_p4, %p236_p3 }
  0x2e   :  { %v49_v19 = vadd.f32 %v48_v16, %v44_v15  ;;  %v61_v20 = vadd.f32 %v60_v18, %v56_v13  ;;  %v143_v63 = vrot.slane %v73_v39, %v105_v37  ;;  %v147_v3 = vrot.slane %v73_v39, %v109_v38 }
  0x2f   :  { %p239_p6 = pnand %p238_p5, %p232_p2 }
  0x30   :  { %50 = vadd.xlane.f32.xlu0 %v49_v19  ;;  %v62_v21 = vadd.f32 %v61_v20, %v57_v17 }
  0x34   :  { %63 = vadd.xlane.f32.xlu0 %v62_v21 }
  0xbd   :  { %v51_v22 = vpop.xlane.xlu0 %50 }
  0xbe   :  { %v65_v23 = vmul.f32 0.0013020834, %v51_v22 }
  0xc0   :  { %v66_v24 = vmul.f32 %v65_v23, %v51_v22  ;;  %v74_v48 = vsub.f32 %v39_v0, %v65_v23  ;;  %v75_v49 = vsub.f32 %v40_v1, %v65_v23  ;;  %v76_v50 = vsub.f32 %v41_v2, %v65_v23 }
  0xc1   :  { %v64_v25 = vpop.xlane.xlu0 %63  ;;  %v77_v51 = vsub.f32 %v42_v7, %v65_v23  ;;  %v78_v53 = vsub.f32 %v43_v11, %v65_v23  ;;  %v79_v54 = vsub.f32 %v44_v15, %v65_v23 }
  0xc2   :  { %v67_v26 = vsub.f32 %v64_v25, %v66_v24 }
  0xc4   :  { %v68_v27 = vmul.f32 0.0013037809, %v67_v26 }
  0xc6   :  { %v69_v29 = vmax.f32 %v68_v27, 0.0 }
  0xc8   :  { %v70_v30 = vadd.f32 1e-05, %v69_v29 }
  0xca   :  { %185 = vrsqrt.f32 %v70_v30 }
  0xd4   :  { %v186_v52 = vpop.eup %185 }
  0xd5   :  { %v80_v57 = vmul.f32 %v186_v52, %v74_v48  ;;  %v81_v58 = vmul.f32 %v186_v52, %v75_v49  ;;  %v82_v59 = vmul.f32 %v186_v52, %v76_v50  ;;  %v83_v60 = vmul.f32 %v186_v52, %v77_v51 }
  0xd6   :  { %v84_v61 = vmul.f32 %v186_v52, %v78_v53  ;;  %v85_v62 = vmul.f32 %v186_v52, %v79_v54 }
  0xd7   :  { %v117_v4 = vmul.f32 %v90_v40, %v80_v57  ;;  %v118_v5 = vmul.f32 %v94_v41, %v81_v58  ;;  %v119_v6 = vmul.f32 %v98_v42, %v82_v59  ;;  %v120_v0 = vmul.f32 %v102_v43, %v83_v60 }
  0xd8   :  { %v121_v1 = vmul.f32 %v106_v44, %v84_v61  ;;  %v122_v2 = vmul.f32 %v110_v45, %v85_v62 }
  0xd9   :  { %v154_v7 = vadd.f32 %v127_v46, %v117_v4  ;;  %v155_v8 = vadd.f32 %v131_v47, %v118_v5  ;;  %v156_v9 = vadd.f32 %v135_v55, %v119_v6  ;;  %v157_v10 = vadd.f32 %v139_v56, %v120_v0 }
  0xda   :  { %v158_v11 = vadd.f32 %v143_v63, %v121_v1  ;;  %v159_v12 = vadd.f32 %v147_v3, %v122_v2 }
  0xdb   :  { %160 = vst [vmem:[#allocation7] sm:$0xff] %v154_v7  ;;  %161 = vst [vmem:[#allocation7 + $0x8] sm:$0xff] %v155_v8 }
  0xdc   :  { %162 = vst [vmem:[#allocation7 + $0x10] sm:$0xff] %v156_v9  ;;  %163 = vst [vmem:[#allocation7 + $0x18] sm:$0xff] %v157_v10 }
  0xdd   :  { %164 = vst [vmem:[#allocation7 + $0x20] sm:$0xff] %v158_v11  ;;  %165 = vst [vmem:[#allocation7 + $0x28] sm:$0xff] %v159_v12 }
  0xde   :  { %242 = shalt.err (!%p239_p6)
}
  0xdf   :  { %s243_s13 = scalar_lea.hbm %s324_s3, 768 }
  0xe0   :  { %p244_p7 = scmp.ne.s32.totalorder %s324_s3, %s243_s13  ;;  %p247_p8 = scmp.lt.u32.totalorder %s243_s13, %s324_s3 }
  0xe2   :  { %p249_p9 = pnand %p247_p8, %p244_p7 }
  0xe4   :  { %252 = shalt.err (!%p249_p9)
}
  0xe5   :  { %175 = dma.vmem_to_hbm [thread:$0]  %s173_s9, 768, %s324_s3, [#allocation4]  }
  0xe6   :  { %257 = dma.done.wait [#allocation4], 768  }
  0xe7   :  { %258 = vsyncadd [#allocation4], 4294966528 }
  0xe8   :  { %179 = vsyncpa [#allocation3], 1 }
  0xe9   :  { %180 = vsyncpa [#allocation6], 1 }
  0xea   :  { %181 = vsyncpa [#allocation4], 1 }

</bundles_post_ra>
